<compile_context>
chip_gen: v7x
topology: tpu7x:2x2x1
jax: 0.10.0
libtpu: 0.0.40
codegen_flags: <defaults>
</compile_context>

<pallas_src>
import jax
import jax.numpy as jnp
from jax.experimental import pallas as pl
from jax.experimental.pallas import tpu as pltpu


def _round_up(x, m):
    return (x + m - 1) // m * m


def _choose_block_b(B, *, max_block_b=512, min_steps=4):
    """Batch tile: 8-aligned, <= max_block_b; when B is large enough, small enough
    that the grid has >= min_steps steps (v7x megacore sharding + DMA/compute overlap)."""
    tb = min(max_block_b, _round_up(B, 8))
    target = _round_up(pl.cdiv(B, min_steps), 8)
    # Only shrink for non-tiny batches; tiny batches are per-step-overhead dominated.
    if 64 <= target < tb:
        tb = target
    return tb


def transnn_kernel(x_ref, w_ref, b_ref, o_ref):
    # x_ref: [TB, C_in]   w_ref: [C_in, N]   b_ref: [1, N]   o_ref: [TB, N]
    y = jnp.dot(x_ref[...], w_ref[...], preferred_element_type=jnp.float32)
    y = y + b_ref[...]                               # f32 bias broadcast over rows
    o_ref[...] = (jnp.tanh(y) * 0.51).astype(o_ref.dtype)


def prepare_transnn_params(weight, bias, compute_dtype=jnp.bfloat16):
    """One-time parameter prep (hoisted out of the per-call path).

    weight: [N, C_in] (PyTorch nn.Linear layout), bias: [N]
    returns (w_t [C_in, N] in compute_dtype, bias2d [1, N] f32).
    """
    w_t = jnp.asarray(weight).T.astype(compute_dtype)
    b2d = jnp.asarray(bias).astype(jnp.float32).reshape(1, -1)
    return w_t, b2d


def transnn_forward(lt, w_t, b2d, n_primitives, *, block_b=512, out_dtype=None):
    """TransNN forward.

    lt:  [B, C_in] activations (ideally already in w_t.dtype to avoid a cast pass)
    w_t: [C_in, N] pre-transposed weight (from prepare_transnn_params)
    b2d: [1, N]    f32 bias
    returns trans: [B, n_primitives, 3] = tanh(lt @ W.T + b) * 0.51
    """
    B, C_in = lt.shape
    N = w_t.shape[1]
    assert N == n_primitives * 3 and w_t.shape[0] == C_in and b2d.shape == (1, N)

    compute_dtype = w_t.dtype
    out_dtype = out_dtype if out_dtype is not None else lt.dtype
    x = lt if lt.dtype == compute_dtype else lt.astype(compute_dtype)

    TB = _choose_block_b(B, max_block_b=block_b)
    grid = (pl.cdiv(B, TB),)   # ragged last block handled by Pallas; no batch padding

    in_item = jnp.dtype(compute_dtype).itemsize
    out_item = jnp.dtype(out_dtype).itemsize

    cost = pl.CostEstimate(
        flops=2 * B * C_in * N,
        transcendentals=B * N,
        bytes_accessed=(B * C_in * in_item      # x
                        + C_in * N * in_item    # resident weight
                        + N * 4                 # bias
                        + B * N * out_item),    # output (true width, no padding)
    )

    # Explicit VMEM budget: resident weight/bias + double-buffered x and out tiles.
    vmem_needed = (C_in * N * in_item + N * 4
                   + 2 * TB * C_in * in_item
                   + 2 * TB * N * out_item)
    compiler_kwargs = dict(dimension_semantics=("parallel",))
    if vmem_needed + vmem_needed // 2 > (16 << 20):      # exceeds v5e default scoped VMEM
        compiler_kwargs["vmem_limit_bytes"] = min(
            vmem_needed + vmem_needed // 2 + (1 << 20), 60 << 20)

    out = pl.pallas_call(
        transnn_kernel,
        out_shape=jax.ShapeDtypeStruct((B, N), out_dtype),
        grid_spec=pl.GridSpec(
            grid=grid,
            in_specs=[
                pl.BlockSpec((TB, C_in), lambda i: (i, 0)),   # batch-tiled activations
                pl.BlockSpec((C_in, N), lambda i: (0, 0)),    # resident weight
                pl.BlockSpec((1, N), lambda i: (0, 0)),       # resident bias
            ],
            out_specs=pl.BlockSpec((TB, N), lambda i: (i, 0)),
        ),
        compiler_params=pltpu.CompilerParams(**compiler_kwargs),
        cost_estimate=cost,
    )(x, w_t, b2d)

    # The module's .view(-1, n_primitives, 3): free metadata reshape.
    return out.reshape(-1, n_primitives, 3)


def transnn_apply(lt, weight, bias, n_primitives, *, use_bf16=True, block_b=512):
    """Convenience one-shot wrapper (prefer prepare_transnn_params + transnn_forward
    when calling repeatedly so the weight transpose is not redone per call)."""
    compute_dtype = jnp.bfloat16 if use_bf16 else lt.dtype
    w_t, b2d = prepare_transnn_params(weight, bias, compute_dtype)
    return transnn_forward(lt, w_t, b2d, n_primitives,
                           block_b=block_b, out_dtype=lt.dtype)


if __name__ == "__main__":
    # Module hyperparameters (small, consistent with the forward pass).
    n_primitives = 16
    input_channels = 32
    batch = 8
    N = n_primitives * 3

    key = jax.random.PRNGKey(0)
    k_x, k_w, k_b = jax.random.split(key, 3)

    # Deterministic init mimicking nn.Linear's U(-1/sqrt(fan_in), 1/sqrt(fan_in)).
    bound = 1.0 / (input_channels ** 0.5)
    weight = jax.random.uniform(
        k_w, (N, input_channels), jnp.float32, -bound, bound)   # PyTorch [out, in] layout
    bias = jax.random.uniform(k_b, (N,), jnp.float32, -bound, bound)
    lt = jax.random.normal(k_x, (batch, input_channels), jnp.float32)

    # Pure-JAX reference (same semantics as the PyTorch forward).
    ref = (jnp.tanh(lt @ weight.T + bias) * 0.51).reshape(-1, n_primitives, 3)

    # 1) Strict f32 path.
    w_t32, b2d32 = prepare_transnn_params(weight, bias, jnp.float32)
    trans = transnn_forward(lt, w_t32, b2d32, n_primitives)
    trans = jax.block_until_ready(trans)
    assert trans.shape == (batch, n_primitives, 3)
    assert jnp.allclose(trans, ref, atol=1e-5, rtol=1e-5)

    # 2) Default bf16-stream path (f32 accumulation / bias / tanh), looser tolerance.
    w_t16, b2d16 = prepare_transnn_params(weight, bias, jnp.bfloat16)
    trans16 = transnn_forward(lt.astype(jnp.bfloat16), w_t16, b2d16, n_primitives,
                              out_dtype=jnp.float32)
    trans16 = jax.block_until_ready(trans16)
    assert trans16.shape == (batch, n_primitives, 3)
    assert jnp.allclose(trans16, ref, atol=2e-2, rtol=2e-2)

    print("KERNEL_OK")
</pallas_src>

<mosaic_0001>
module attributes {stable_mosaic.version = 11 : i64} {
  func.func @transnn_kernel(%arg0: i32, %arg1: memref<8x32xf32, #tpu.memory_space<vmem>>, %arg2: memref<32x48xf32, #tpu.memory_space<vmem>>, %arg3: memref<1x48xf32, #tpu.memory_space<vmem>>, %arg4: memref<8x48xf32, #tpu.memory_space<vmem>>) attributes {dimension_semantics = [#tpu.dimension_semantics<parallel>], iteration_bounds = array<i64: 1>, scalar_prefetch = 0 : i64, scratch_operands = 0 : i64, tpu.core_type = #tpu.core_type<tc>, window_params = [{transform_indices = @transform_0, window_bounds = array<i64: 8, 32>}, {pipeline_mode = #tpu.pipeline_mode<synchronous>, transform_indices = @transform_1, window_bounds = array<i64: 32, 48>}, {pipeline_mode = #tpu.pipeline_mode<synchronous>, transform_indices = @transform_2, window_bounds = array<i64: 1, 48>}, {transform_indices = @transform_3, window_bounds = array<i64: 8, 48>}]} {
    %c0 = arith.constant 0 : index
    %c0_0 = arith.constant 0 : index
    %0 = vector.load %arg1[%c0, %c0_0] : memref<8x32xf32, #tpu.memory_space<vmem>>, vector<8x32xf32>
    %c0_1 = arith.constant 0 : index
    %c0_2 = arith.constant 0 : index
    %1 = vector.load %arg2[%c0_1, %c0_2] : memref<32x48xf32, #tpu.memory_space<vmem>>, vector<32x48xf32>
    %cst = arith.constant dense<0.000000e+00> : vector<8x48xf32>
    %2 = tpu.matmul %0, %1, %cst {dimension_numbers = #tpu.dot_dimension_numbers<[1], [0], [0], [1], [0, 0, 1, 1], [], []>} : vector<8x32xf32>, vector<32x48xf32>, vector<8x48xf32> -> vector<8x48xf32>
    %c0_3 = arith.constant 0 : index
    %c0_4 = arith.constant 0 : index
    %3 = vector.load %arg3[%c0_3, %c0_4] : memref<1x48xf32, #tpu.memory_space<vmem>>, vector<1x48xf32>
    %4 = vector.broadcast %3 : vector<1x48xf32> to vector<8x48xf32>
    %5 = arith.addf %2, %4 : vector<8x48xf32>
    %6 = math.tanh %5 : vector<8x48xf32>
    %cst_5 = arith.constant 5.100000e-01 : f32
    %7 = vector.broadcast %cst_5 : f32 to vector<8x48xf32>
    %8 = arith.mulf %6, %7 : vector<8x48xf32>
    %c0_6 = arith.constant 0 : index
    %c0_7 = arith.constant 0 : index
    %9 = vector.load %arg4[%c0_6, %c0_7] : memref<8x48xf32, #tpu.memory_space<vmem>>, vector<8x48xf32>
    tpu.vector_store %arg4[%c0_6, %c0_7], %8 {strides = array<i32>} : memref<8x48xf32, #tpu.memory_space<vmem>>, vector<8x48xf32>,
    return
  }
  func.func @transform_0(%arg0: i32) -> (i32, i32) {
    %c0_i32 = arith.constant 0 : i32
    %c0_i32_0 = arith.constant 0 : i32
    return %arg0, %c0_i32 : i32, i32
  }
  func.func @transform_1(%arg0: i32) -> (i32, i32) {
    %c0_i32 = arith.constant 0 : i32
    %c0_i32_0 = arith.constant 0 : i32
    %c0_i32_1 = arith.constant 0 : i32
    return %c0_i32, %c0_i32_0 : i32, i32
  }
  func.func @transform_2(%arg0: i32) -> (i32, i32) {
    %c0_i32 = arith.constant 0 : i32
    %c0_i32_0 = arith.constant 0 : i32
    %c0_i32_1 = arith.constant 0 : i32
    return %c0_i32, %c0_i32_0 : i32, i32
  }
  func.func @transform_3(%arg0: i32) -> (i32, i32) {
    %c0_i32 = arith.constant 0 : i32
    %c0_i32_0 = arith.constant 0 : i32
    return %arg0, %c0_i32 : i32, i32
  }
}

</mosaic_0001>

<bundles_post_ra>
// kernel: tpu_custom_call.1
= control target key start
LH: loop header
LB: loop body
LE: loop exit
PB: predicated region body
PF: predicated region fallthrough
CT: control target
= control target key end

     0   :  { %8 = vsyncpa [#allocation3], 0  ;;  %s327_s0 = inlined_call_operand.hbm [shape: f32[8,32], index: 0, kind: input, shape index: {}]   ;;  %s328_s1 = inlined_call_operand.hbm [shape: f32[32,48], index: 1, kind: input, shape index: {}]   ;;  %s329_s2 = inlined_call_operand.vmem [shape: f32[1,48], index: 2, kind: input, shape index: {}]   ;;  %s330_s3 = inlined_call_operand.hbm [shape: f32[8,48], index: 3, kind: output, shape index: {}]  }
   0x1   :  { %9 = vsyncpa [#allocation6], 0 }
   0x2   :  { %10 = vsyncpa [#allocation4], 0  ;;  %s253_s12 = smov [#allocation2]   ;;  %s254_s14 = smov [#allocation5]  }
   0x3   :  { %s17_s13 = sshll.u32 %s253_s12, 4  ;;  %s26_s15 = sshll.u32 %s254_s14, 4  ;;  %s18_s13 = int_to_ptr.vmem [resolvable:$true] %s17_s13  ;;  %s281_s15 = int_to_ptr.vmem [resolvable:$true] %s26_s15 }
   0x4   :  { %s181_s18 = scalar_lea.hbm %s327_s0, 128 }
   0x5   :  { %p182_p0 = scmp.ne.s32.totalorder %s327_s0, %s181_s18  ;;  %p185_p1 = scmp.lt.u32.totalorder %s181_s18, %s327_s0 }
   0x7   :  { %p187_p2 = pnand %p185_p1, %p182_p0 }
   0x9   :  { %190 = shalt.err (!%p187_p2)
}
   0xa   :  { %s191_s23 = scalar_lea.vmem %s18_s13, 128  ;;  %p196_p4 = scmp.lt.s32.totalorder %s18_s13, %s18_s13 }
   0xb   :  { %p192_p3 = scmp.ne.s32.totalorder %s18_s13, %s191_s23  ;;  %p197_p5 = scmp.lt.s32.totalorder %s191_s23, %s191_s23 }
   0xd   :  { %p198_p6 = por %p197_p5, %p196_p4 }
   0xf   :  { %p199_p7 = pnand %p198_p6, %p192_p3 }
  0x11   :  { %202 = shalt.err (!%p199_p7)
}
  0x12   :  { %20 = dma.hbm_to_vmem [thread:$0]  %s327_s0, 128, %s18_s13, [#allocation3]  }
  0x13   :  { %s203_s28 = scalar_lea.hbm %s328_s1, 512 }
  0x14   :  { %p204_p8 = scmp.ne.s32.totalorder %s328_s1, %s203_s28  ;;  %p207_p9 = scmp.lt.u32.totalorder %s203_s28, %s328_s1 }
  0x16   :  { %p209_p10 = pnand %p207_p9, %p204_p8 }
  0x18   :  { %212 = shalt.err (!%p209_p10)
}
  0x19   :  { %s213_s6 = scalar_lea.vmem %s281_s15, 512  ;;  %p218_p12 = scmp.lt.s32.totalorder %s281_s15, %s281_s15 }
  0x1a   :  { %p214_p11 = scmp.ne.s32.totalorder %s281_s15, %s213_s6  ;;  %p219_p13 = scmp.lt.s32.totalorder %s213_s6, %s213_s6 }
  0x1c   :  { %p220_p0 = por %p219_p13, %p218_p12 }
  0x1e   :  { %p221_p1 = pnand %p220_p0, %p214_p11 }
  0x20   :  { %224 = shalt.err (!%p221_p1)
}
  0x21   :  { %s255_s0 = smov 128   ;;  %s256_s7 = smov 8  }
  0x22   :  { %32 = dma.hbm_to_vmem [thread:$0]  %s328_s1, 512, %s281_s15, [#allocation6], %s255_s0, %s255_s0, %s256_s7  }
  0x23   :  { %247 = dma.done.wait [#allocation3], 128  }
  0x24   :  { %248 = vsyncadd [#allocation3], 4294967168 }
  0x25   :  { %249 = dma.done.wait [#allocation6], 512  }
  0x26   :  { %250 = vsyncadd [#allocation6], 4294966784  ;;  %v257_v0 = vmov 0.0|0.0   ;;  %vm258_vm0 = vmmov 0   ;;  %v259_v1 = vmov 0.0   ;;  %v42_v2 = vld [vmem:[#allocation5] sm:$0xff] }
  0x27   :  { %165 = vmatprep.subr.bf16.mxu0 %v257_v0  ;;  %162 = vmatprep.mubr.msk.f32.mxu0 %vm258_vm0, %v259_v1  ;;  %v43_v3 = vld [vmem:[#allocation5 + $0x8] sm:$0xff]  ;;  %v44_v4 = vld [vmem:[#allocation5 + $0x10] sm:$0xff]  ;;  %v45_v6 = vld [vmem:[#allocation5 + $0x18] sm:$0xff]  ;;  %vm53_vm1 = vcmask 261120   ;;  %s260_s11 = smov [#allocation7]   ;;  %vm129_vm2 = vcmask 392192  }
  0x28   :  { %v166_v5 = vpack.c.bf16 %v43_v3, %v42_v2  ;;  %v169_v7 = vpack.c.bf16 %v45_v6, %v44_v4  ;;  %v41_v8 = vld [vmem:[#allocation2] sm:$0xff]  ;;  %s137_s12 = sshll.u32 %s260_s11, 4  ;;  %s138_s12 = int_to_ptr.vmem [resolvable:$true] %s137_s12 }
  0x29   :  { %v147_v9 = vld [vmem:[%s329_s2] ss:$0 sm:$0xff]  ;;  %s225_s13 = scalar_lea.vmem %s138_s12, 128  ;;  %p230_p3 = scmp.lt.s32.totalorder %s138_s12, %s138_s12 }
  0x2a   :  { %167 = vmatpush3.bf16.msra.mxu0 %v166_v5  ;;  %p226_p2 = scmp.ne.s32.totalorder %s138_s12, %s225_s13  ;;  %p231_p4 = scmp.lt.s32.totalorder %s225_s13, %s225_s13 }
  0x2b   :  { %168 = vmatprep.subr.bf16.mxu0 %v257_v0 }
  0x2c   :  { %p232_p5 = por %p231_p4, %p230_p3 }
  0x2e   :  { %170 = vmatpush3.bf16.msra.mxu0 %v169_v7  ;;  %p233_p6 = pnand %p232_p5, %p226_p2 }
  0x31   :  { %163 = vmatmul.mubr.msk.f32.vlgmr.msra.gmra.mrb[0].mxu0 %vm53_vm1, %v41_v8 }
 0x104   :  { %v123_v10 = vpop.f32.mrb[0].mxu0 }
 0x105   :  { %v124_v11 = vadd.f32 %v147_v9, %v123_v10  ;;  %v164_v12 = vpop.f32.mrb[1].mxu0 }
 0x107   :  { %179 = vtanh.f32 %v124_v11 }
 0x111   :  { %v180_v13 = vpop.eup %179 }
 0x112   :  { %v128_v14 = vmul.f32 0.51, %v180_v13 }
 0x114   :  { %130 = vst.msk [vmem:[#allocation7] sm:$0xff] %vm129_vm2, %v128_v14 }
 0x115   :  { %236 = shalt.err (!%p233_p6)
}
 0x116   :  { %s237_s15 = scalar_lea.hbm %s330_s3, 128 }
 0x117   :  { %p238_p7 = scmp.ne.s32.totalorder %s330_s3, %s237_s15  ;;  %p241_p8 = scmp.lt.u32.totalorder %s237_s15, %s330_s3 }
 0x119   :  { %p243_p9 = pnand %p241_p8, %p238_p7 }
 0x11b   :  { %246 = shalt.err (!%p243_p9)
}
 0x11c   :  { %140 = dma.vmem_to_hbm [thread:$0]  %s138_s12, 128, %s330_s3, [#allocation4]  }
 0x11d   :  { %251 = dma.done.wait [#allocation4], 128  }
 0x11e   :  { %252 = vsyncadd [#allocation4], 4294967168 }
 0x11f   :  { %144 = vsyncpa [#allocation3], 1 }
 0x120   :  { %145 = vsyncpa [#allocation6], 1 }
 0x121   :  { %146 = vsyncpa [#allocation4], 1 }

</bundles_post_ra>
